<compile_context>
chip_gen: v6e
topology: v6e:2x2x1
jax: 0.10.0
libtpu: 0.0.40
codegen_flags: <defaults>
</compile_context>

<pallas_src>
import functools

import jax
import jax.numpy as jnp
from jax.experimental import pallas as pl
from jax.experimental.pallas import tpu as pltpu

BN_EPS = 1e-5
HIDDEN = 128
LANE = 128
MAX_TILE_B = 1024


def _round_up(v, m):
    return ((v + m - 1) // m) * m


# ----------------------------------------------------------------------------
# Kernel
# ----------------------------------------------------------------------------
def _dueling_kernel(x_ref, w1_ref, w23_ref, b_feat_ref, w_va_ref, b_va_ref,
                    w_head_ref, b_head_ref, q_ref, *, n_actions):
    """Whole DuelingDQN forward for one batch tile (all weights VMEM-resident)."""
    # feature layer 1: (TB, n_obs_pad) bf16 x (n_obs_pad, 128) bf16 -> f32
    z = jnp.dot(x_ref[...], w1_ref[...], preferred_element_type=jnp.float32)
    h = jnp.maximum(z + b_feat_ref[0], 0.0)                   # (TB, 128) f32

    # feature layers 2 & 3 (Linear with folded BN -> ReLU)
    for l in range(2):
        z = jnp.dot(h.astype(jnp.bfloat16), w23_ref[l],
                    preferred_element_type=jnp.float32)
        h = jnp.maximum(z + b_feat_ref[l + 1], 0.0)

    # fused value/advantage hidden layer: one (128, 256) MXU pass
    z = jnp.dot(h.astype(jnp.bfloat16), w_va_ref[...],
                preferred_element_type=jnp.float32)
    va = jnp.maximum(z + b_va_ref[...], 0.0)                  # (TB, 256) f32

    # fused block-diagonal head, lane-padded to 128:
    #   lanes [0, n_actions) = advantages, lane n_actions = value, rest = 0.
    head = jnp.dot(va.astype(jnp.bfloat16), w_head_ref[...],
                   preferred_element_type=jnp.float32) + b_head_ref[...]

    lane = jax.lax.broadcasted_iota(jnp.int32, head.shape, 1)
    adv_sum = jnp.sum(jnp.where(lane < n_actions, head, 0.0),
                      axis=1, keepdims=True)
    adv_mean = adv_sum * (1.0 / n_actions)                    # static reciprocal
    value = head[:, n_actions:n_actions + 1]                  # (TB, 1)

    # q = V + (A - mean(A)); valid in lanes [0, n_actions), garbage elsewhere
    # (sliced off by the wrapper). Lane-dense (128-wide) store.
    q_ref[...] = value + (head - adv_mean)


# ----------------------------------------------------------------------------
# Parameter handling (plain-JAX glue, run ONCE per weight update, not per call)
# ----------------------------------------------------------------------------
def _fold_linear_bn(w, b, bn):
    """Fold eval-mode BatchNorm1d into the preceding Linear. Exact algebra."""
    scale = bn["gamma"] * jax.lax.rsqrt(bn["var"] + BN_EPS)
    w_f = w * scale[None, :]
    b_f = (b - bn["mean"]) * scale + bn["beta"]
    return w_f.astype(jnp.bfloat16), b_f.astype(jnp.float32)


def fold_params(params):
    folded = {}
    for name in ("l1", "l2", "l3", "v1", "a1"):
        p = params[name]
        folded[name] = _fold_linear_bn(p["w"], p["b"], p["bn"])
    for name in ("v2", "a2"):
        p = params[name]
        folded[name] = (p["w"].astype(jnp.bfloat16), p["b"].astype(jnp.float32))
    return folded


def pack_dueling_params(params, n_actions):
    """Build the 8 coalesced kernel operands. Call once and cache the result."""
    h = HIDDEN
    folded = fold_params(params)
    w1, b1 = folded["l1"]
    w2, b2 = folded["l2"]
    w3, b3 = folded["l3"]
    wv1, bv1 = folded["v1"]
    wa1, ba1 = folded["a1"]
    wv2, bv2 = folded["v2"]
    wa2, ba2 = folded["a2"]

    n_obs = w1.shape[0]
    # Pad observation dim to a multiple of 16 (bf16 sublane packing).
    n_obs_pad = max(16, _round_up(n_obs, 16))
    w1p = jnp.zeros((n_obs_pad, h), jnp.bfloat16).at[:n_obs].set(w1)

    w23 = jnp.stack([w2, w3])                                  # (2, 128, 128) bf16
    b_feat = jnp.stack([b1, b2, b3])                           # (3, 128)      f32

    # Fused value|advantage first layers.
    w_va = jnp.concatenate([wv1, wa1], axis=1)                 # (128, 256) bf16
    b_va = jnp.concatenate([bv1, ba1])[None, :]                # (1, 256)   f32

    # Block-diagonal lane-padded head:
    #   rows [0,128)   -> value column   (lane n_actions)
    #   rows [128,256) -> advantage cols (lanes [0, n_actions))
    w_head = jnp.zeros((2 * h, LANE), jnp.bfloat16)
    w_head = w_head.at[h:, :n_actions].set(wa2)
    w_head = w_head.at[:h, n_actions].set(wv2[:, 0])
    b_head = jnp.zeros((LANE,), jnp.float32)
    b_head = b_head.at[:n_actions].set(ba2)
    b_head = b_head.at[n_actions].set(bv2[0])
    b_head = b_head[None, :]                                   # (1, 128) f32

    return (w1p, w23, b_feat, w_va, b_va, w_head, b_head)


def init_dueling_dqn_params(key, n_observations, n_actions, hidden=HIDDEN):
    """PyTorch-style Linear init plus non-trivial eval-mode BN running stats."""
    def linear(k, fan_in, fan_out):
        kw, kb = jax.random.split(k)
        bound = 1.0 / (fan_in ** 0.5)
        w = jax.random.uniform(kw, (fan_in, fan_out), jnp.float32, -bound, bound)
        b = jax.random.uniform(kb, (fan_out,), jnp.float32, -bound, bound)
        return w, b

    def bn(k, n):
        kg, kb, km, kv = jax.random.split(k, 4)
        return {
            "gamma": jax.random.uniform(kg, (n,), jnp.float32, 0.8, 1.2),
            "beta": jax.random.uniform(kb, (n,), jnp.float32, -0.2, 0.2),
            "mean": jax.random.uniform(km, (n,), jnp.float32, -0.2, 0.2),
            "var": jax.random.uniform(kv, (n,), jnp.float32, 0.5, 1.5),
        }

    ks = jax.random.split(key, 12)
    p = {}
    w, b = linear(ks[0], n_observations, hidden)
    p["l1"] = {"w": w, "b": b, "bn": bn(ks[1], hidden)}
    w, b = linear(ks[2], hidden, hidden)
    p["l2"] = {"w": w, "b": b, "bn": bn(ks[3], hidden)}
    w, b = linear(ks[4], hidden, hidden)
    p["l3"] = {"w": w, "b": b, "bn": bn(ks[5], hidden)}
    w, b = linear(ks[6], hidden, hidden)
    p["v1"] = {"w": w, "b": b, "bn": bn(ks[7], hidden)}
    w, b = linear(ks[8], hidden, 1)
    p["v2"] = {"w": w, "b": b}
    w, b = linear(ks[9], hidden, hidden)
    p["a1"] = {"w": w, "b": b, "bn": bn(ks[10], hidden)}
    w, b = linear(ks[11], hidden, n_actions)
    p["a2"] = {"w": w, "b": b}
    return p


# ----------------------------------------------------------------------------
# Forward wrapper
# ----------------------------------------------------------------------------
def _choose_batch_tiling(batch):
    """Pick (padded batch, tile) — tile multiple of 16, <= MAX_TILE_B, and
    at least 2 grid steps when the batch allows (keeps both v7x TCs busy)."""
    bp = _round_up(batch, 16)
    n_tiles = max(1, pl.cdiv(bp, MAX_TILE_B))
    if bp > 32 and n_tiles == 1:
        n_tiles = 2
    tile_b = _round_up(pl.cdiv(bp, n_tiles), 16)
    return tile_b * n_tiles, tile_b


@functools.partial(jax.jit, static_argnames=("n_actions",))
def dueling_dqn_forward(x, packed, n_actions):
    """x: (B, n_obs) f32/bf16. packed: output of pack_dueling_params()."""
    w1p, w23, b_feat, w_va, b_va, w_head, b_head = packed
    batch, n_obs = x.shape
    n_obs_pad = w1p.shape[0]
    assert n_obs <= n_obs_pad, "x feature dim does not match packed params"
    assert n_actions < LANE, "n_actions must be < 128"

    bp, tile_b = _choose_batch_tiling(batch)

    # Slim bf16 input: only the (bp, n_obs_pad) block ever touches HBM.
    x_pad = jnp.zeros((bp, n_obs_pad), jnp.bfloat16)
    x_pad = x_pad.at[:batch, :n_obs].set(x.astype(jnp.bfloat16))

    const2 = lambda i: (0, 0)
    const3 = lambda i: (0, 0, 0)

    q_pad = pl.pallas_call(
        functools.partial(_dueling_kernel, n_actions=n_actions),
        out_shape=jax.ShapeDtypeStruct((bp, LANE), jnp.float32),
        grid=(bp // tile_b,),
        in_specs=[
            pl.BlockSpec((tile_b, n_obs_pad), lambda i: (i, 0)),  # x tile (bf16)
            pl.BlockSpec((n_obs_pad, HIDDEN), const2),            # first-layer weight
            pl.BlockSpec((2, HIDDEN, HIDDEN), const3),            # stacked feature weights
            pl.BlockSpec((3, HIDDEN), const2),                    # stacked feature biases
            pl.BlockSpec((HIDDEN, 2 * HIDDEN), const2),           # fused V|A first layer
            pl.BlockSpec((1, 2 * HIDDEN), const2),
            pl.BlockSpec((2 * HIDDEN, LANE), const2),             # block-diag head
            pl.BlockSpec((1, LANE), const2),
        ],
        out_specs=pl.BlockSpec((tile_b, LANE), lambda i: (i, 0)),  # lane-dense Q
        compiler_params=pltpu.CompilerParams(
            dimension_semantics=("parallel",),
            vmem_limit_bytes=32 * 1024 * 1024),
    )(x_pad, w1p, w23, b_feat, w_va, b_va, w_head, b_head)

    # Contract: only lanes [0, n_actions) of q_pad are valid Q-values.
    return q_pad[:batch, :n_actions]


# ----------------------------------------------------------------------------
# Plain-JAX reference (un-fused, un-padded, per-stream), same BN folding and
# bf16-matmul / f32-accumulation precision as the kernel. BN folding itself is
# exact algebra; bf16 deviates from a pure-f32 PyTorch forward by ~<1e-2 rel.
# ----------------------------------------------------------------------------
def _reference_forward(x, params):
    folded = fold_params(params)

    def lbr(h, name):
        w, b = folded[name]
        z = jnp.dot(h.astype(jnp.bfloat16), w,
                    preferred_element_type=jnp.float32) + b
        return jnp.maximum(z, 0.0)

    h = lbr(x, "l1")
    h = lbr(h, "l2")
    h = lbr(h, "l3")

    vh = lbr(h, "v1")
    wv2, bv2 = folded["v2"]
    value = jnp.dot(vh.astype(jnp.bfloat16), wv2,
                    preferred_element_type=jnp.float32) + bv2

    ah = lbr(h, "a1")
    wa2, ba2 = folded["a2"]
    adv = jnp.dot(ah.astype(jnp.bfloat16), wa2,
                  preferred_element_type=jnp.float32) + ba2

    return value + (adv - jnp.mean(adv, axis=1, keepdims=True))


if __name__ == "__main__":
    n_observations = 32
    n_actions = 8
    batch = 8

    key = jax.random.PRNGKey(0)
    k_params, k_x = jax.random.split(key)

    params = init_dueling_dqn_params(k_params, n_observations, n_actions)
    x = jax.random.normal(k_x, (batch, n_observations), jnp.float32)

    # Pack once (outside the per-step forward), reuse across calls.
    packed = pack_dueling_params(params, n_actions)
    packed = jax.block_until_ready(packed)

    q = dueling_dqn_forward(x, packed, n_actions)
    q = jax.block_until_ready(q)

    q_ref = _reference_forward(x, params)
    assert q.shape == (batch, n_actions)
    assert jnp.allclose(q, q_ref, atol=2e-3, rtol=2e-3), "mismatch vs JAX reference"

    print("KERNEL_OK")
</pallas_src>

<mosaic_0001>
module attributes {stable_mosaic.version = 11 : i64} {
  func.func @_dueling_kernel(%arg0: i32, %arg1: memref<16x32xbf16, #tpu.memory_space<vmem>>, %arg2: memref<32x128xbf16, #tpu.memory_space<vmem>>, %arg3: memref<2x128x128xbf16, #tpu.memory_space<vmem>>, %arg4: memref<3x128xf32, #tpu.memory_space<vmem>>, %arg5: memref<128x256xbf16, #tpu.memory_space<vmem>>, %arg6: memref<1x256xf32, #tpu.memory_space<vmem>>, %arg7: memref<256x128xbf16, #tpu.memory_space<vmem>>, %arg8: memref<1x128xf32, #tpu.memory_space<vmem>>, %arg9: memref<16x128xf32, #tpu.memory_space<vmem>>) attributes {dimension_semantics = [#tpu.dimension_semantics<parallel>], iteration_bounds = array<i64: 1>, scalar_prefetch = 0 : i64, scratch_operands = 0 : i64, tpu.core_type = #tpu.core_type<tc>, window_params = [{transform_indices = @transform_0, window_bounds = array<i64: 16, 32>}, {pipeline_mode = #tpu.pipeline_mode<synchronous>, transform_indices = @transform_1, window_bounds = array<i64: 32, 128>}, {pipeline_mode = #tpu.pipeline_mode<synchronous>, transform_indices = @transform_2, window_bounds = array<i64: 2, 128, 128>}, {pipeline_mode = #tpu.pipeline_mode<synchronous>, transform_indices = @transform_3, window_bounds = array<i64: 3, 128>}, {pipeline_mode = #tpu.pipeline_mode<synchronous>, transform_indices = @transform_4, window_bounds = array<i64: 128, 256>}, {pipeline_mode = #tpu.pipeline_mode<synchronous>, transform_indices = @transform_5, window_bounds = array<i64: 1, 256>}, {pipeline_mode = #tpu.pipeline_mode<synchronous>, transform_indices = @transform_6, window_bounds = array<i64: 256, 128>}, {pipeline_mode = #tpu.pipeline_mode<synchronous>, transform_indices = @transform_7, window_bounds = array<i64: 1, 128>}, {transform_indices = @transform_8, window_bounds = array<i64: 16, 128>}]} {
    %c0 = arith.constant 0 : index
    %c0_0 = arith.constant 0 : index
    %0 = vector.load %arg1[%c0, %c0_0] : memref<16x32xbf16, #tpu.memory_space<vmem>>, vector<16x32xbf16>
    %c0_1 = arith.constant 0 : index
    %c0_2 = arith.constant 0 : index
    %1 = vector.load %arg2[%c0_1, %c0_2] : memref<32x128xbf16, #tpu.memory_space<vmem>>, vector<32x128xbf16>
    %cst = arith.constant dense<0.000000e+00> : vector<16x128xf32>
    %2 = tpu.matmul %0, %1, %cst {dimension_numbers = #tpu.dot_dimension_numbers<[1], [0], [0], [1], [0, 0, 1, 1], [], []>} : vector<16x32xbf16>, vector<32x128xbf16>, vector<16x128xf32> -> vector<16x128xf32>
    %c0_3 = arith.constant 0 : index
    %c0_4 = arith.constant 0 : index
    %3 = vector.load %arg4[%c0_3, %c0_4] : memref<3x128xf32, #tpu.memory_space<vmem>>, vector<1x128xf32>
    %4 = vector.shape_cast %3 : vector<1x128xf32> to vector<128xf32>
    %5 = vector.shape_cast %4 : vector<128xf32> to vector<1x128xf32>
    %6 = vector.broadcast %5 : vector<1x128xf32> to vector<16x128xf32>
    %7 = arith.addf %2, %6 : vector<16x128xf32>
    %cst_5 = arith.constant 0.000000e+00 : f32
    %8 = vector.broadcast %cst_5 : f32 to vector<16x128xf32>
    %9 = arith.maximumf %7, %8 : vector<16x128xf32>
    %10 = arith.truncf %9 : vector<16x128xf32> to vector<16x128xbf16>
    %c0_6 = arith.constant 0 : index
    %c0_7 = arith.constant 0 : index
    %c0_8 = arith.constant 0 : index
    %11 = vector.load %arg3[%c0_6, %c0_7, %c0_8] : memref<2x128x128xbf16, #tpu.memory_space<vmem>>, vector<1x128x128xbf16>
    %12 = vector.shape_cast %11 : vector<1x128x128xbf16> to vector<128x128xbf16>
    %cst_9 = arith.constant dense<0.000000e+00> : vector<16x128xf32>
    %13 = tpu.matmul %10, %12, %cst_9 {dimension_numbers = #tpu.dot_dimension_numbers<[1], [0], [0], [1], [0, 0, 1, 1], [], []>} : vector<16x128xbf16>, vector<128x128xbf16>, vector<16x128xf32> -> vector<16x128xf32>
    %c1 = arith.constant 1 : index
    %c0_10 = arith.constant 0 : index
    %14 = vector.load %arg4[%c1, %c0_10] : memref<3x128xf32, #tpu.memory_space<vmem>>, vector<1x128xf32>
    %15 = vector.shape_cast %14 : vector<1x128xf32> to vector<128xf32>
    %16 = vector.shape_cast %15 : vector<128xf32> to vector<1x128xf32>
    %17 = vector.broadcast %16 : vector<1x128xf32> to vector<16x128xf32>
    %18 = arith.addf %13, %17 : vector<16x128xf32>
    %cst_11 = arith.constant 0.000000e+00 : f32
    %19 = vector.broadcast %cst_11 : f32 to vector<16x128xf32>
    %20 = arith.maximumf %18, %19 : vector<16x128xf32>
    %21 = arith.truncf %20 : vector<16x128xf32> to vector<16x128xbf16>
    %c1_12 = arith.constant 1 : index
    %c0_13 = arith.constant 0 : index
    %c0_14 = arith.constant 0 : index
    %22 = vector.load %arg3[%c1_12, %c0_13, %c0_14] : memref<2x128x128xbf16, #tpu.memory_space<vmem>>, vector<1x128x128xbf16>
    %23 = vector.shape_cast %22 : vector<1x128x128xbf16> to vector<128x128xbf16>
    %cst_15 = arith.constant dense<0.000000e+00> : vector<16x128xf32>
    %24 = tpu.matmul %21, %23, %cst_15 {dimension_numbers = #tpu.dot_dimension_numbers<[1], [0], [0], [1], [0, 0, 1, 1], [], []>} : vector<16x128xbf16>, vector<128x128xbf16>, vector<16x128xf32> -> vector<16x128xf32>
    %c2 = arith.constant 2 : index
    %c0_16 = arith.constant 0 : index
    %25 = vector.load %arg4[%c2, %c0_16] : memref<3x128xf32, #tpu.memory_space<vmem>>, vector<1x128xf32>
    %26 = vector.shape_cast %25 : vector<1x128xf32> to vector<128xf32>
    %27 = vector.shape_cast %26 : vector<128xf32> to vector<1x128xf32>
    %28 = vector.broadcast %27 : vector<1x128xf32> to vector<16x128xf32>
    %29 = arith.addf %24, %28 : vector<16x128xf32>
    %cst_17 = arith.constant 0.000000e+00 : f32
    %30 = vector.broadcast %cst_17 : f32 to vector<16x128xf32>
    %31 = arith.maximumf %29, %30 : vector<16x128xf32>
    %32 = arith.truncf %31 : vector<16x128xf32> to vector<16x128xbf16>
    %c0_18 = arith.constant 0 : index
    %c0_19 = arith.constant 0 : index
    %33 = vector.load %arg5[%c0_18, %c0_19] : memref<128x256xbf16, #tpu.memory_space<vmem>>, vector<128x256xbf16>
    %cst_20 = arith.constant dense<0.000000e+00> : vector<16x256xf32>
    %34 = tpu.matmul %32, %33, %cst_20 {dimension_numbers = #tpu.dot_dimension_numbers<[1], [0], [0], [1], [0, 0, 1, 1], [], []>} : vector<16x128xbf16>, vector<128x256xbf16>, vector<16x256xf32> -> vector<16x256xf32>
    %c0_21 = arith.constant 0 : index
    %c0_22 = arith.constant 0 : index
    %35 = vector.load %arg6[%c0_21, %c0_22] : memref<1x256xf32, #tpu.memory_space<vmem>>, vector<1x256xf32>
    %36 = vector.broadcast %35 : vector<1x256xf32> to vector<16x256xf32>
    %37 = arith.addf %34, %36 : vector<16x256xf32>
    %cst_23 = arith.constant 0.000000e+00 : f32
    %38 = vector.broadcast %cst_23 : f32 to vector<16x256xf32>
    %39 = arith.maximumf %37, %38 : vector<16x256xf32>
    %40 = arith.truncf %39 : vector<16x256xf32> to vector<16x256xbf16>
    %c0_24 = arith.constant 0 : index
    %c0_25 = arith.constant 0 : index
    %41 = vector.load %arg7[%c0_24, %c0_25] : memref<256x128xbf16, #tpu.memory_space<vmem>>, vector<256x128xbf16>
    %cst_26 = arith.constant dense<0.000000e+00> : vector<16x128xf32>
    %42 = tpu.matmul %40, %41, %cst_26 {dimension_numbers = #tpu.dot_dimension_numbers<[1], [0], [0], [1], [0, 0, 1, 1], [], []>} : vector<16x256xbf16>, vector<256x128xbf16>, vector<16x128xf32> -> vector<16x128xf32>
    %c0_27 = arith.constant 0 : index
    %c0_28 = arith.constant 0 : index
    %43 = vector.load %arg8[%c0_27, %c0_28] : memref<1x128xf32, #tpu.memory_space<vmem>>, vector<1x128xf32>
    %44 = vector.broadcast %43 : vector<1x128xf32> to vector<16x128xf32>
    %45 = arith.addf %42, %44 : vector<16x128xf32>
    %46 = tpu.iota {dimensions = array<i32: 1>} : vector<16x128xi32>
    %c8_i32 = arith.constant 8 : i32
    %47 = vector.broadcast %c8_i32 : i32 to vector<16x128xi32>
    %48 = arith.cmpi slt, %46, %47 : vector<16x128xi32>
    %cst_29 = arith.constant 0.000000e+00 : f32
    %49 = vector.broadcast %cst_29 : f32 to vector<16x128xf32>
    %50 = arith.select %48, %45, %49 : vector<16x128xi1>, vector<16x128xf32>
    %cst_30 = arith.constant dense<0.000000e+00> : vector<16xf32>
    %51 = vector.multi_reduction <add>, %50, %cst_30 [1] : vector<16x128xf32> to vector<16xf32>
    %52 = vector.shape_cast %51 : vector<16xf32> to vector<16x1xf32>
    %cst_31 = arith.constant 1.250000e-01 : f32
    %53 = vector.broadcast %cst_31 : f32 to vector<16x1xf32>
    %54 = arith.mulf %52, %53 : vector<16x1xf32>
    %55 = vector.extract_strided_slice %45 {offsets = [0, 8], sizes = [16, 1], strides = [1, 1]} : vector<16x128xf32> to vector<16x1xf32>
    %56 = vector.broadcast %54 : vector<16x1xf32> to vector<16x128xf32>
    %57 = arith.subf %45, %56 : vector<16x128xf32>
    %58 = vector.broadcast %55 : vector<16x1xf32> to vector<16x128xf32>
    %59 = arith.addf %58, %57 : vector<16x128xf32>
    %c0_32 = arith.constant 0 : index
    %c0_33 = arith.constant 0 : index
    %60 = vector.load %arg9[%c0_32, %c0_33] : memref<16x128xf32, #tpu.memory_space<vmem>>, vector<16x128xf32>
    tpu.vector_store %arg9[%c0_32, %c0_33], %59 {strides = array<i32>} : memref<16x128xf32, #tpu.memory_space<vmem>>, vector<16x128xf32>,
    return
  }
  func.func @transform_0(%arg0: i32) -> (i32, i32) {
    %c0_i32 = arith.constant 0 : i32
    %c0_i32_0 = arith.constant 0 : i32
    return %arg0, %c0_i32 : i32, i32
  }
  func.func @transform_1(%arg0: i32) -> (i32, i32) {
    %c0_i32 = arith.constant 0 : i32
    %c0_i32_0 = arith.constant 0 : i32
    %c0_i32_1 = arith.constant 0 : i32
    return %c0_i32, %c0_i32_0 : i32, i32
  }
  func.func @transform_2(%arg0: i32) -> (i32, i32, i32) {
    %c0_i32 = arith.constant 0 : i32
    %c0_i32_0 = arith.constant 0 : i32
    %c0_i32_1 = arith.constant 0 : i32
    %c0_i32_2 = arith.constant 0 : i32
    return %c0_i32, %c0_i32_0, %c0_i32_1 : i32, i32, i32
  }
  func.func @transform_3(%arg0: i32) -> (i32, i32) {
    %c0_i32 = arith.constant 0 : i32
    %c0_i32_0 = arith.constant 0 : i32
    %c0_i32_1 = arith.constant 0 : i32
    return %c0_i32, %c0_i32_0 : i32, i32
  }
  func.func @transform_4(%arg0: i32) -> (i32, i32) {
    %c0_i32 = arith.constant 0 : i32
    %c0_i32_0 = arith.constant 0 : i32
    %c0_i32_1 = arith.constant 0 : i32
    return %c0_i32, %c0_i32_0 : i32, i32
  }
  func.func @transform_5(%arg0: i32) -> (i32, i32) {
    %c0_i32 = arith.constant 0 : i32
    %c0_i32_0 = arith.constant 0 : i32
    %c0_i32_1 = arith.constant 0 : i32
    return %c0_i32, %c0_i32_0 : i32, i32
  }
  func.func @transform_6(%arg0: i32) -> (i32, i32) {
    %c0_i32 = arith.constant 0 : i32
    %c0_i32_0 = arith.constant 0 : i32
    %c0_i32_1 = arith.constant 0 : i32
    return %c0_i32, %c0_i32_0 : i32, i32
  }
  func.func @transform_7(%arg0: i32) -> (i32, i32) {
    %c0_i32 = arith.constant 0 : i32
    %c0_i32_0 = arith.constant 0 : i32
    %c0_i32_1 = arith.constant 0 : i32
    return %c0_i32, %c0_i32_0 : i32, i32
  }
  func.func @transform_8(%arg0: i32) -> (i32, i32) {
    %c0_i32 = arith.constant 0 : i32
    %c0_i32_0 = arith.constant 0 : i32
    return %arg0, %c0_i32 : i32, i32
  }
}

</mosaic_0001>

<bundles_post_ra>
// kernel: dueling_dqn_forward.1
= control target key start
LH: loop header
LB: loop body
LE: loop exit
PB: predicated region body
PF: predicated region fallthrough
CT: control target
= control target key end

     0   :  { %13 = vsyncpa [#allocation3], 0  ;;  %s1142_s0 = inlined_call_operand.vmem [shape: bf16[16,32], index: 0, kind: input, shape index: {}]   ;;  %s1143_s1 = inlined_call_operand.vmem [shape: bf16[32,128], index: 1, kind: input, shape index: {}]   ;;  %s1144_s2 = inlined_call_operand.hbm [shape: bf16[2,128,128], index: 2, kind: input, shape index: {}]   ;;  %s1145_s3 = inlined_call_operand.vmem [shape: f32[3,128], index: 3, kind: input, shape index: {}]   ;;  %s1146_s4 = inlined_call_operand.hbm [shape: bf16[128,256], index: 4, kind: input, shape index: {}]   ;;  %s1147_s5 = inlined_call_operand.vmem [shape: f32[1,256], index: 5, kind: input, shape index: {}]   ;;  %s1148_s6 = inlined_call_operand.hbm [shape: bf16[256,128], index: 6, kind: input, shape index: {}]   ;;  %s1149_s7 = inlined_call_operand.vmem [shape: f32[1,128], index: 7, kind: input, shape index: {}]   ;;  %s1150_s8 = inlined_call_operand.vmem [shape: f32[16,128], index: 8, kind: output, shape index: {}]  }
   0x1   :  { %14 = vsyncpa [#allocation5], 0  ;;  %s1023_s27 = smov [#allocation4]  }
   0x2   :  { %s38_s28 = sshll.u32 %s1023_s27, 4  ;;  %s39_s28 = int_to_ptr.vmem [resolvable:$true] %s38_s28 }
   0x3   :  { %s967_s29 = scalar_lea.vmem %s39_s28, 2048  ;;  %p972_p1 = scmp.lt.s32.totalorder %s39_s28, %s39_s28 }
   0x4   :  { %p968_p0 = scmp.ne.s32.totalorder %s39_s28, %s967_s29  ;;  %p973_p2 = scmp.lt.s32.totalorder %s967_s29, %s967_s29 }
   0x6   :  { %p974_p3 = por %p973_p2, %p972_p1 }
   0x8   :  { %p975_p4 = pnand %p974_p3, %p968_p0 }
   0xa   :  { %978 = shalt.err (!%p975_p4)
}
   0xb   :  { %s1024_s30 = smov 128   ;;  %s1025_s9 = smov 8  }
   0xc   :  { %44 = dma.hbm_to_vmem [thread:$0]  %s1146_s4, 2048, %s39_s28, [#allocation5], %s1024_s30, %s1024_s30, %s1025_s9  }
   0xd   :  { %s1026_s12 = smov [#allocation2]  }
   0xe   :  { %s24_s13 = sshll.u32 %s1026_s12, 4  ;;  %s25_s13 = int_to_ptr.vmem [resolvable:$true] %s24_s13 }
   0xf   :  { %s987_s14 = scalar_lea.vmem %s25_s13, 2048  ;;  %p992_p6 = scmp.lt.s32.totalorder %s25_s13, %s25_s13 }
  0x10   :  { %p988_p5 = scmp.ne.s32.totalorder %s25_s13, %s987_s14  ;;  %p993_p7 = scmp.lt.s32.totalorder %s987_s14, %s987_s14 }
  0x12   :  { %p994_p8 = por %p993_p7, %p992_p6 }
  0x14   :  { %p995_p9 = pnand %p994_p8, %p988_p5 }
  0x16   :  { %998 = shalt.err (!%p995_p9)
}
  0x17   :  { %s1027_s15 = smov 64   ;;  %s1028_s16 = smov 4  }
  0x18   :  { %30 = dma.hbm_to_vmem [thread:$0]  %s1144_s2, 2048, %s25_s13, [#allocation3], %s1027_s15, %s1027_s15, %s1028_s16  }
  0x19   :  { %s1029_s19 = smov [#allocation6]  }
  0x1a   :  { %s52_s20 = sshll.u32 %s1029_s19, 4  ;;  %s53_s20 = int_to_ptr.vmem [resolvable:$true] %s52_s20 }
  0x1b   :  { %s1007_s4 = scalar_lea.vmem %s53_s20, 2048  ;;  %p1012_p11 = scmp.lt.s32.totalorder %s53_s20, %s53_s20 }
  0x1c   :  { %p1008_p10 = scmp.ne.s32.totalorder %s53_s20, %s1007_s4  ;;  %p1013_p12 = scmp.lt.s32.totalorder %s1007_s4, %s1007_s4 }
  0x1e   :  { %p1014_p13 = por %p1013_p12, %p1012_p11 }
  0x20   :  { %p1015_p0 = pnand %p1014_p13, %p1008_p10 }
  0x22   :  { %1018 = shalt.err (!%p1015_p0)
}
  0x23   :  { %58 = dma.hbm_to_vmem [thread:$0]  %s1148_s6, 2048, %s53_s20, [#allocation5], %s1027_s15, %s1027_s15, %s1028_s16  }
  0x24   :  { %1019 = dma.done.wait [#allocation3], 2048  }
  0x25   :  { %1020 = vsyncadd [#allocation3], 4294965248 }
  0x26   :  { %1021 = dma.done.wait [#allocation5], 4096  }
  0x27   :  { %1022 = vsyncadd [#allocation5], 4294963200  ;;  %v1030_v0 = vmov 0.0   ;;  %vm1031_vm0 = vmmov 0   ;;  %v900_v1 = vld [vmem:[%s1143_s1 + $0x8] sm:$0xff]   ;;  %v901_v2 = vld [vmem:[%s1143_s1] sm:$0xff]  }
  0x28   :  { %839 = vmatprep.subr.bf16.mxu0 %v1030_v0  ;;  %843 = vmatprep.mubr.msk.bf16.mxu0 %vm1031_vm0, %v1030_v0  ;;  %v903_v3 = vld [vmem:[#allocation2 + $0x38] sm:$0xff]   ;;  %v902_v4 = vld [vmem:[%s1142_s0] sm:$0xff]   ;;  %v904_v5 = vld [vmem:[#allocation2 + $0x30] sm:$0xff]   ;;  %vm99_vm1 = vcmask 261120   ;;  %v1032_v56 = vmov 0  }
  0x29   :  { %847 = vmatprep.subr.bf16.mxu1 %v1030_v0  ;;  %863 = vmatprep.mubr.msk.bf16.mxu1 %vm1031_vm0, %v1030_v0  ;;  %v905_v6 = vld [vmem:[#allocation2 + $0x28] sm:$0xff]   ;;  %v906_v7 = vld [vmem:[#allocation2 + $0x20] sm:$0xff]   ;;  %v907_v8 = vld [vmem:[#allocation2 + $0x18] sm:$0xff]  }
  0x2a   :  { %840 = vmatpush3.bf16.msra.mxu0 %v900_v1  ;;  %848 = vmatpush3.bf16.msra.mxu1 %v903_v3  ;;  %v908_v9 = vld [vmem:[#allocation2 + $0x10] sm:$0xff]   ;;  %v909_v10 = vld [vmem:[#allocation2 + $0x8] sm:$0xff]   ;;  %v910_v11 = vld [vmem:[#allocation2] sm:$0xff]  }
  0x2b   :  { %841 = vmatprep.subr.bf16.mxu0 %v1030_v0  ;;  %849 = vmatprep.subr.bf16.mxu1 %v1030_v0  ;;  %v911_v12 = vld [vmem:[#allocation2 + $0x78] sm:$0xff]   ;;  %v912_v13 = vld [vmem:[#allocation2 + $0x70] sm:$0xff]   ;;  %v913_v14 = vld [vmem:[#allocation2 + $0x68] sm:$0xff]  }
  0x2c   :  { %v914_v15 = vld [vmem:[#allocation2 + $0x60] sm:$0xff]   ;;  %v915_v16 = vld [vmem:[#allocation2 + $0x58] sm:$0xff]   ;;  %v916_v27 = vld [vmem:[#allocation2 + $0x50] sm:$0xff]  }
  0x2d   :  { %v740_v17 = vld [vmem:[%s1145_s3] ss:$0 sm:$0xff]  ;;  %v917_v28 = vld [vmem:[#allocation2 + $0x48] sm:$0xff]   ;;  %v919_v30 = vld [vmem:[#allocation4 + $0x70] ss:$8 sps:$4 sm:$0xff]  }
  0x2e   :  { %842 = vmatpush3.bf16.msra.mxu0 %v901_v2  ;;  %850 = vmatpush3.bf16.msra.mxu1 %v904_v5  ;;  %v918_v29 = vld [vmem:[#allocation2 + $0x40] sm:$0xff]   ;;  %v921_v31 = vld [vmem:[#allocation4 + $0x74] ss:$8 sps:$4 sm:$0xff]   ;;  %v925_v35 = vld [vmem:[#allocation4 + $0x50] ss:$8 sps:$4 sm:$0xff]  }
  0x2f   :  { %867 = vmatprep.subr.bf16.mxu0 %v1030_v0  ;;  %851 = vmatprep.subr.bf16.mxu1 %v1030_v0  ;;  %v924_v32 = vld [vmem:[#allocation4 + $0x64] ss:$8 sps:$4 sm:$0xff]   ;;  %v922_v33 = vld [vmem:[#allocation4 + $0x60] ss:$8 sps:$4 sm:$0xff]   ;;  %v927_v34 = vld [vmem:[#allocation4 + $0x54] ss:$8 sps:$4 sm:$0xff]  }
  0x30   :  { %v930_v36 = vld [vmem:[#allocation4 + $0x44] ss:$8 sps:$4 sm:$0xff]   ;;  %v928_v37 = vld [vmem:[#allocation4 + $0x40] ss:$8 sps:$4 sm:$0xff]   ;;  %v933_v38 = vld [vmem:[#allocation4 + $0x34] ss:$8 sps:$4 sm:$0xff]  }
  0x31   :  { %844 = vmatmul.mubr.msk.bf16.vlgmr.msra.gmra.mxu0 %vm99_vm1, %v902_v4  ;;  %v931_v39 = vld [vmem:[#allocation4 + $0x30] ss:$8 sps:$4 sm:$0xff]   ;;  %v936_v40 = vld [vmem:[#allocation4 + $0x24] ss:$8 sps:$4 sm:$0xff]   ;;  %v934_v41 = vld [vmem:[#allocation4 + $0x20] ss:$8 sps:$4 sm:$0xff]  }
  0x32   :  { %883 = vmatprep.mubr.msk.bf16.mxu0 %vm1031_vm0, %v1030_v0  ;;  %852 = vmatpush3.bf16.msra.mxu1 %v905_v6  ;;  %v745_v42 = vld [vmem:[%s1145_s3 + $0x1] ss:$0 sm:$0xff]  ;;  %v939_v52 = vld [vmem:[#allocation4 + $0x14] ss:$8 sps:$4 sm:$0xff]   ;;  %v937_v53 = vld [vmem:[#allocation4 + $0x10] ss:$8 sps:$4 sm:$0xff]  }
  0x33   :  { %853 = vmatprep.subr.bf16.mxu1 %v1030_v0  ;;  %868 = vmatpush3.bf16.msra.mxu0 %v911_v12  ;;  %v942_v54 = vld [vmem:[#allocation4 + $0x4] ss:$8 sps:$4 sm:$0xff]   ;;  %v940_v55 = vld [vmem:[#allocation4] ss:$8 sps:$4 sm:$0xff]   ;;  %v943_v57 = vld [vmem:[#allocation6 + $0x78] sm:$0xff]  }
  0x34   :  { %869 = vmatprep.subr.bf16.mxu0 %v1030_v0  ;;  %v944_v58 = vld [vmem:[#allocation6 + $0x38] sm:$0xff]   ;;  %v945_v59 = vld [vmem:[#allocation6 + $0x70] sm:$0xff]   ;;  %v947_v61 = vld [vmem:[#allocation6 + $0x68] sm:$0xff]  }
  0x35   :  { %v946_v60 = vld [vmem:[#allocation6 + $0x30] sm:$0xff]   ;;  %v948_v62 = vld [vmem:[#allocation6 + $0x28] sm:$0xff]   ;;  %v949_v63 = vld [vmem:[#allocation6 + $0x60] sm:$0xff]  }
  0x36   :  { %854 = vmatpush3.bf16.msra.mxu1 %v906_v7  ;;  %v951_v1 = vld [vmem:[#allocation6 + $0x58] sm:$0xff]   ;;  %v754_v3 = vld [vmem:[%s1145_s3 + $0x2] ss:$0 sm:$0xff] }
  0x37   :  { %855 = vmatprep.subr.bf16.mxu1 %v1030_v0  ;;  %870 = vmatpush3.bf16.msra.mxu0 %v912_v13  ;;  %v952_v2 = vld [vmem:[#allocation6 + $0x18] sm:$0xff]   ;;  %v953_v13 = vld [vmem:[#allocation6 + $0x50] sm:$0xff]  }
  0x38   :  { %871 = vmatprep.subr.bf16.mxu0 %v1030_v0 }
  0x3a   :  { %856 = vmatpush3.bf16.msra.mxu1 %v907_v8 }
  0x3b   :  { %857 = vmatprep.subr.bf16.mxu1 %v1030_v0  ;;  %872 = vmatpush3.bf16.msra.mxu0 %v913_v14  ;;  %v954_v14 = vld [vmem:[#allocation6 + $0x10] sm:$0xff]  }
  0x3c   :  { %873 = vmatprep.subr.bf16.mxu0 %v1030_v0 }
  0x3e   :  { %858 = vmatpush3.bf16.msra.mxu1 %v908_v9 }
  0x3f   :  { %859 = vmatprep.subr.bf16.mxu1 %v1030_v0  ;;  %874 = vmatpush3.bf16.msra.mxu0 %v914_v15  ;;  %v955_v15 = vld [vmem:[#allocation6 + $0x48] sm:$0xff]  }
  0x40   :  { %875 = vmatprep.subr.bf16.mxu0 %v1030_v0 }
  0x42   :  { %860 = vmatpush3.bf16.msra.mxu1 %v909_v10 }
  0x43   :  { %861 = vmatprep.subr.bf16.mxu1 %v1030_v0  ;;  %876 = vmatpush3.bf16.msra.mxu0 %v915_v16  ;;  %v956_v16 = vld [vmem:[#allocation6 + $0x8] sm:$0xff]  }
  0x44   :  { %877 = vmatprep.subr.bf16.mxu0 %v1030_v0 }
  0x46   :  { %862 = vmatpush3.bf16.msra.mxu1 %v910_v11 }
  0x47   :  { %878 = vmatpush3.bf16.msra.mxu0 %v916_v27  ;;  %482 = vmatprep.subr.bf16.mxu1 %v921_v31 }
  0x48   :  { %879 = vmatprep.subr.bf16.mxu0 %v1030_v0 }
  0x4b   :  { %880 = vmatpush3.bf16.msra.mxu0 %v917_v28 }
  0x4c   :  { %881 = vmatprep.subr.bf16.mxu0 %v1030_v0  ;;  %v950_v0 = vld [vmem:[#allocation6 + $0x20] sm:$0xff]  }
  0x4f   :  { %882 = vmatpush3.bf16.msra.mxu0 %v918_v29 }
  0x50   :  { %817 = vmatprep.subr.bf16.mxu0 %v943_v57 }
  0xf1   :  { %v137_v18 = vpop.f32.mrf.mxu0 }
  0xf2   :  { %v138_v20 = vadd.f32 %v740_v17, %v137_v18  ;;  %v958_v18 = vld [vmem:[#allocation6] sm:$0xff]  }
  0xf3   :  { %v845_v19 = vpop.f32.mrf.mxu0 }
  0xf4   :  { %v144_v24 = vmax.f32 %v138_v20, 0.0  ;;  %v392_v19 = vlaneseq }
  0xf5   :  { %v140_v21 = vpop.f32.mrf.mxu0 }
  0xf6   :  { %v141_v22 = vadd.f32 %v740_v17, %v140_v21  ;;  %v957_v17 = vld [vmem:[#allocation6 + $0x40] sm:$0xff]   ;;  %v393_v20 = vshrl.u32 %v392_v19, 7 }
  0xf7   :  { %v846_v23 = vpop.f32.mrf.mxu0 }
  0xf8   :  { %v145_v25 = vmax.f32 %v141_v22, 0.0  ;;  %v398_v21 = vsub.s32 1, %v393_v20  ;;  %v394_v22 = vsub.s32 0, %v393_v20  ;;  %v390_v23 = vld [vmem:[%s1147_s5] sm:$0x3] }
  0xfa   :  { %v146_v26 = vpack.c.bf16 %v145_v25, %v144_v24  ;;  %v399_v25 = vrot.slane %v390_v23, %v398_v21 }
  0xfc   :  { %864 = vmatmul.mubr.bf16.vlgmr.msra.gmra.mxu1 %v146_v26  ;;  %v395_v26 = vrot.slane %v390_v23, %v394_v22 }
  0xfd   :  { %483 = vmatpush1.bf16.msra.mxu1 %v919_v30  ;;  %514 = vmatprep.mubr.bf16.mxu1 %v1032_v56 }
  0xfe   :  { %484 = vmatprep.subr.bf16.mxu1 %v924_v32 }
 0x101   :  { %485 = vmatpush1.bf16.msra.mxu1 %v922_v33 }
 0x102   :  { %486 = vmatprep.subr.bf16.mxu1 %v927_v34 }
 0x105   :  { %487 = vmatpush1.bf16.msra.mxu1 %v925_v35 }
 0x106   :  { %488 = vmatprep.subr.bf16.mxu1 %v930_v36 }
 0x109   :  { %489 = vmatpush1.bf16.msra.mxu1 %v928_v37 }
 0x10a   :  { %490 = vmatprep.subr.bf16.mxu1 %v933_v38 }
 0x10d   :  { %491 = vmatpush1.bf16.msra.mxu1 %v931_v39 }
 0x10e   :  { %492 = vmatprep.subr.bf16.mxu1 %v936_v40  ;;  %v1033_v40 = vmov 8  }
 0x10f   :  { %898 = vset.pattern.permute.xlu1 %v1033_v40  ;;  %899 = vset.pattern.permute.xlu0 %v1033_v40 }
 0x111   :  { %493 = vmatpush1.bf16.msra.mxu1 %v934_v41 }
 0x112   :  { %494 = vmatprep.subr.bf16.mxu1 %v939_v52 }
 0x115   :  { %495 = vmatpush1.bf16.msra.mxu1 %v937_v53 }
 0x116   :  { %496 = vmatprep.subr.bf16.mxu1 %v942_v54 }
 0x119   :  { %497 = vmatpush1.bf16.msra.mxu1 %v940_v55 }
 0x1bc   :  { %v250_v43 = vpop.f32.mrf.mxu1 }
 0x1bd   :  { %v251_v45 = vadd.f32 %v745_v42, %v250_v43  ;;  %v779_v43 = vld [vmem:[%s1149_s7] ss:$0 sm:$0xff] }
 0x1be   :  { %v865_v44 = vpop.f32.mrf.mxu1 }
 0x1bf   :  { %v257_v49 = vmax.f32 %v251_v45, 0.0 }
 0x1c0   :  { %v253_v46 = vpop.f32.mrf.mxu1 }
 0x1c1   :  { %v254_v47 = vadd.f32 %v745_v42, %v253_v46  ;;  %v708_v42 = vand.u32 127, %v392_v19 }
 0x1c2   :  { %v866_v48 = vpop.f32.mrf.mxu1 }
 0x1c3   :  { %v258_v50 = vmax.f32 %v254_v47, 0.0  ;;  %vm709_vm2 = vcmp.lt.s32.totalorder %v708_v42, 8 }
 0x1c5   :  { %v259_v51 = vpack.c.bf16 %v258_v50, %v257_v49 }
 0x1c7   :  { %884 = vmatmul.mubr.bf16.vlgmr.msra.gmra.mxu0 %v259_v51 }
 0x1c8   :  { %818 = vmatpush3.bf16.msra.mxu0 %v944_v58 }
 0x1c9   :  { %819 = vmatprep.subr.bf16.mxu0 %v945_v59 }
 0x1cc   :  { %820 = vmatpush3.bf16.msra.mxu0 %v946_v60 }
 0x1cd   :  { %821 = vmatprep.subr.bf16.mxu0 %v947_v61 }
 0x1d0   :  { %822 = vmatpush3.bf16.msra.mxu0 %v948_v62 }
 0x1d1   :  { %823 = vmatprep.subr.bf16.mxu0 %v949_v63 }
 0x1d4   :  { %824 = vmatpush3.bf16.msra.mxu0 %v950_v0 }
 0x1d5   :  { %825 = vmatprep.subr.bf16.mxu0 %v951_v1 }
 0x1d8   :  { %826 = vmatpush3.bf16.msra.mxu0 %v952_v2 }
 0x1d9   :  { %827 = vmatprep.subr.bf16.mxu0 %v953_v13 }
 0x1dc   :  { %828 = vmatpush3.bf16.msra.mxu0 %v954_v14 }
 0x1dd   :  { %829 = vmatprep.subr.bf16.mxu0 %v955_v15 }
 0x1e0   :  { %830 = vmatpush3.bf16.msra.mxu0 %v956_v16 }
 0x1e1   :  { %831 = vmatprep.subr.bf16.mxu0 %v957_v17 }
 0x1e4   :  { %832 = vmatpush3.bf16.msra.mxu0 %v958_v18 }
 0x287   :  { %v364_v4 = vpop.f32.mrf.mxu0 }
 0x288   :  { %v365_v6 = vadd.f32 %v754_v3, %v364_v4 }
 0x289   :  { %v885_v5 = vpop.f32.mrf.mxu0 }
 0x28a   :  { %v371_v10 = vmax.f32 %v365_v6, 0.0 }
 0x28b   :  { %v367_v7 = vpop.f32.mrf.mxu0 }
 0x28c   :  { %v368_v8 = vadd.f32 %v754_v3, %v367_v7 }
 0x28d   :  { %v886_v9 = vpop.f32.mrf.mxu0 }
 0x28e   :  { %v372_v11 = vmax.f32 %v368_v8, 0.0 }
 0x290   :  { %v373_v12 = vpack.c.bf16 %v372_v11, %v371_v10 }
 0x292   :  { %515 = vmatmul.mubr.bf16.vlgmr.msra.gmra.mxu1 %v373_v12 }
 0x352   :  { %v516_v24 = vpop.f32.mrf.mxu1 }
 0x353   :  { %v517_v31 = vadd.f32 %v516_v24, %v395_v26 }
 0x354   :  { %v518_v27 = vpop.f32.mrf.mxu1 }
 0x355   :  { %v519_v29 = vadd.f32 %v518_v27, %v399_v25  ;;  %v525_v37 = vmax.f32 %v517_v31, 0.0 }
 0x356   :  { %v520_v28 = vpop.f32.mrf.mxu1 }
 0x357   :  { %v521_v30 = vadd.f32 %v520_v28, %v395_v26  ;;  %v526_v35 = vmax.f32 %v519_v29, 0.0 }
 0x358   :  { %v522_v32 = vpop.f32.mrf.mxu1 }
 0x359   :  { %v523_v33 = vadd.f32 %v522_v32, %v399_v25  ;;  %v527_v34 = vmax.f32 %v521_v30, 0.0 }
 0x35b   :  { %v528_v36 = vmax.f32 %v523_v33, 0.0  ;;  %v529_v39 = vpack.c.bf16 %v527_v34, %v525_v37 }
 0x35d   :  { %v530_v38 = vpack.c.bf16 %v528_v36, %v526_v35 }
 0x35f   :  { %698 = vmatprep.mubr.bf16.mxu0 %v530_v38 }
 0x360   :  { %699 = vmatmul.mubr.bf16.vlgmr.msra.gmra.mxu0 %v529_v39 }
 0x420   :  { %v833_v41 = vpop.f32.mrf.mxu0 }
 0x422   :  { %v834_v44 = vpop.f32.mrf.mxu0 }
 0x423   :  { %v835_v45 = vadd.f32 %v834_v44, %v833_v41 }
 0x424   :  { %v836_v46 = vpop.f32.mrf.mxu0 }
 0x425   :  { %v701_v47 = vadd.f32 %v835_v45, %v779_v43 }
 0x426   :  { %v837_v48 = vpop.f32.mrf.mxu0 }
 0x427   :  { %v838_v49 = vadd.f32 %v837_v48, %v836_v46  ;;  %722 = vperm.xlu1 %898, %v701_v47   ;;  %v710_v50 = vsel %vm709_vm2, %v701_v47, 0.0 }
 0x428   :  { %712 = vadd.xlane.f32.xlu0 %v710_v50 }
 0x429   :  { %v704_v51 = vadd.f32 %v838_v49, %v779_v43 }
 0x42b   :  { %727 = vperm.xlu1 %898, %v704_v51   ;;  %v711_v52 = vsel %vm709_vm2, %v704_v51, 0.0 }
 0x42c   :  { %714 = vadd.xlane.f32.xlu0 %v711_v52 }
 0x4a2   :  { %v723_v55 = vpop.permute.xlu1 %722 }
 0x4a6   :  { %v728_v61 = vpop.permute.xlu1 %727 }
 0x4b1   :  { %v713_v53 = vpop.xlane.xlu0 %712 }
 0x4b2   :  { %v716_v54 = vmul.f32 0.125, %v713_v53 }
 0x4b4   :  { %v718_v56 = vsub.f32 %v701_v47, %v716_v54 }
 0x4b5   :  { %v715_v57 = vpop.xlane.xlu0 %714 }
 0x4b6   :  { %v730_v58 = vadd.f32 %v723_v55, %v718_v56  ;;  %v717_v59 = vmul.f32 0.125, %v715_v57 }
 0x4b8   :  { %732 = vst [vmem:[%s1150_s8] sm:$0xff] %v730_v58  ;;  %v719_v60 = vsub.f32 %v704_v51, %v717_v59 }
 0x4ba   :  { %v731_v62 = vadd.f32 %v728_v61, %v719_v60 }
 0x4bc   :  { %733 = vst [vmem:[%s1150_s8 + $0x8] sm:$0xff] %v731_v62 }
 0x4bd   :  { %738 = vsyncpa [#allocation3], 1 }
 0x4be   :  { %739 = vsyncpa [#allocation5], 1 }

</bundles_post_ra>
